<compile_context>
chip_gen: v7x
topology: tpu7x:2x2x1
jax: 0.10.0
libtpu: 0.0.40
codegen_flags: <defaults>
</compile_context>

<pallas_src>
import jax
import jax.numpy as jnp
from jax.experimental import pallas as pl
from jax.experimental.pallas import tpu as pltpu

_EPS = 1e-12  # torch.nn.functional.normalize default eps


def _normalize_kernel(x_ref, o_ref):
    # x_ref / o_ref: (C, LANE_TILE) block of the (C, P) feature matrix.
    # NOTE: in the ragged last block, out-of-bounds lanes hold undefined data.
    # Every pixel column is independent and out-of-bounds lanes are masked on
    # store, so garbage (even NaN from Inf*0) never reaches a kept output
    # lane.  Do not add any cross-column reuse of this block's contents.
    x = x_ref[...].astype(jnp.float32)
    ss = jnp.sum(x * x, axis=0, keepdims=True)           # (1, LANE_TILE) sum of squares
    # 1 / max(sqrt(ss), eps) == rsqrt(max(ss, eps^2))  (exact, sqrt monotone)
    inv = jax.lax.rsqrt(jnp.maximum(ss, _EPS * _EPS))    # EUP op, broadcast over C
    o_ref[...] = (x * inv).astype(o_ref.dtype)


def _vmem_capacity_bytes() -> int:
    """Physical VMEM per TensorCore; conservative fallback if the query fails."""
    try:
        return int(pltpu.get_tpu_info().vmem_capacity_bytes)
    except Exception:
        return 64 << 20  # v7x per-TensorCore VMEM (smallest of v5e/v6e/v7x)


def _pick_lane_tile(C: int, P: int) -> int:
    """Lane-tile width (multiple of 128).

    Big enough to amortize the ~0.35 us per-grid-step overhead (per-buffer
    byte budget, so the tile scales ~1/C), small enough to keep >= 4 grid
    steps (>= 2 per v7x TensorCore) so the grid can be sharded across both
    cores while each core still double-buffers.
    """
    vmem = _vmem_capacity_bytes()
    target_block_bytes = (8 << 20) if vmem >= (100 << 20) else (4 << 20)
    p128 = pl.cdiv(P, 128) * 128
    budget_cap = max((target_block_bytes // (4 * C)) // 128 * 128, 128)
    four_step_cap = max((p128 // 4) // 128 * 128, 128)
    tile = min(budget_cap, four_step_cap, 16384)
    return max(min(tile, p128), 128)


def _normalize_channels(feats_2d: jax.Array, lane_tile: int | None = None) -> jax.Array:
    """L2-normalize a (C, P) f32 matrix along axis 0 (channels) with Pallas."""
    C, P = feats_2d.shape
    if lane_tile is None:
        lane_tile = _pick_lane_tile(C, P)

    block_bytes = C * lane_tile * 4  # one f32 block
    # In + out blocks, double-buffered, plus headroom; never more than ~75%
    # of physical VMEM (keeps compiler-internal scratch room, esp. on v7x).
    vmem_limit = max(
        min(4 * block_bytes + (2 << 20), int(_vmem_capacity_bytes() * 0.75)),
        16 << 20,
    )

    fn = pl.pallas_call(
        _normalize_kernel,
        out_shape=jax.ShapeDtypeStruct((C, P), feats_2d.dtype),
        grid=(pl.cdiv(P, lane_tile),),  # ragged last block: Pallas masks the store
        in_specs=[pl.BlockSpec((C, lane_tile), lambda j: (0, j))],
        out_specs=pl.BlockSpec((C, lane_tile), lambda j: (0, j)),
        compiler_params=pltpu.CompilerParams(
            dimension_semantics=("parallel",),
            vmem_limit_bytes=vmem_limit,
        ),
    )
    return jax.jit(fn)(feats_2d)


class ExplicitUpsampler:
    """JAX/Pallas port of the PyTorch ExplicitUpsampler."""

    def __init__(self, size: int, dim: int, key: jax.Array):
        self.size = size
        self.dim = dim
        # Raw random parameter, normalized ONCE (as torch does at Parameter
        # construction) and cached; forwards just return the cached grid.
        # TODO(synk): if init latency ever matters, fuse the Gaussian draw into
        # the kernel (pltpu.prng_seed + pltpu.stateful_normal) to collapse the
        # three HBM passes (write raw, read raw, write normalized) into one
        # write pass; kept separate so feats_raw matches jax.random.normal.
        self.feats_raw = jax.random.normal(key, (1, dim, size, size), dtype=jnp.float32)
        feats_2d = self.feats_raw.reshape(dim, size * size)  # NCHW (N=1) -> (C, H*W)
        self.feats = _normalize_channels(feats_2d).reshape(1, dim, size, size)

    def __call__(self, x):
        del x  # forward(x) ignores its input, matching the PyTorch module
        return self.feats


if __name__ == "__main__":
    key = jax.random.PRNGKey(0)
    k_feats, k_x = jax.random.split(key)

    size, dim = 16, 32
    model = ExplicitUpsampler(size=size, dim=dim, key=k_feats)

    # Dummy input (ignored by forward, matching the PyTorch module).
    x = jax.random.normal(k_x, (2, 4, 16, 16), dtype=jnp.float32)
    out = jax.block_until_ready(model(x))

    # Pure-JAX reference of F.normalize(randn, dim=1).
    ref = model.feats_raw / jnp.maximum(
        jnp.sqrt(jnp.sum(model.feats_raw ** 2, axis=1, keepdims=True)), _EPS
    )
    assert out.shape == (1, dim, size, size)
    assert jnp.allclose(out, ref, atol=1e-5, rtol=1e-5)

    # Exercise the ragged last-block path (pixel count not a multiple of 128),
    # which now runs without any wrapper pad / slice.
    feats_odd = jax.random.normal(k_x, (24, 17 * 17), dtype=jnp.float32)
    got_odd = jax.block_until_ready(_normalize_channels(feats_odd))
    ref_odd = feats_odd / jnp.maximum(
        jnp.sqrt(jnp.sum(feats_odd ** 2, axis=0, keepdims=True)), _EPS
    )
    assert got_odd.shape == feats_odd.shape
    assert jnp.allclose(got_odd, ref_odd, atol=1e-5, rtol=1e-5)

    print("KERNEL_OK")
</pallas_src>

<mosaic_0001>
module attributes {stable_mosaic.version = 11 : i64} {
  func.func @_normalize_kernel(%arg0: i32, %arg1: memref<32x128xf32, #tpu.memory_space<vmem>>, %arg2: memref<32x128xf32, #tpu.memory_space<vmem>>) attributes {dimension_semantics = [#tpu.dimension_semantics<parallel>], iteration_bounds = array<i64: 2>, scalar_prefetch = 0 : i64, scratch_operands = 0 : i64, tpu.core_type = #tpu.core_type<tc>, window_params = [{transform_indices = @transform_0, window_bounds = array<i64: 32, 128>}, {transform_indices = @transform_1, window_bounds = array<i64: 32, 128>}]} {
    %c0 = arith.constant 0 : index
    %c0_0 = arith.constant 0 : index
    %0 = vector.load %arg1[%c0, %c0_0] : memref<32x128xf32, #tpu.memory_space<vmem>>, vector<32x128xf32>
    %1 = arith.mulf %0, %0 : vector<32x128xf32>
    %cst = arith.constant dense<0.000000e+00> : vector<128xf32>
    %2 = vector.multi_reduction <add>, %1, %cst [0] : vector<32x128xf32> to vector<128xf32>
    %3 = vector.shape_cast %2 : vector<128xf32> to vector<1x128xf32>
    %cst_1 = arith.constant 1.000000e-24 : f32
    %4 = vector.broadcast %cst_1 : f32 to vector<1x128xf32>
    %5 = arith.maximumf %3, %4 : vector<1x128xf32>
    %6 = math.rsqrt %5 : vector<1x128xf32>
    %7 = vector.broadcast %6 : vector<1x128xf32> to vector<32x128xf32>
    %8 = arith.mulf %0, %7 : vector<32x128xf32>
    %c0_2 = arith.constant 0 : index
    %c0_3 = arith.constant 0 : index
    %9 = vector.load %arg2[%c0_2, %c0_3] : memref<32x128xf32, #tpu.memory_space<vmem>>, vector<32x128xf32>
    tpu.vector_store %arg2[%c0_2, %c0_3], %8 {strides = array<i32>} : memref<32x128xf32, #tpu.memory_space<vmem>>, vector<32x128xf32>,
    return
  }
  func.func @transform_0(%arg0: i32) -> (i32, i32) {
    %c0_i32 = arith.constant 0 : i32
    %c0_i32_0 = arith.constant 0 : i32
    return %c0_i32, %arg0 : i32, i32
  }
  func.func @transform_1(%arg0: i32) -> (i32, i32) {
    %c0_i32 = arith.constant 0 : i32
    %c0_i32_0 = arith.constant 0 : i32
    return %c0_i32, %arg0 : i32, i32
  }
}

</mosaic_0001>

<bundles_post_ra>
// kernel: tpu_custom_call.1
= control target key start
LH: loop header
LB: loop body
LE: loop exit
PB: predicated region body
PF: predicated region fallthrough
CT: control target
= control target key end

     0   :  { %6 = vsyncpa [#allocation3], 0  ;;  %s593_s0 = inlined_call_operand.hbm [shape: f32[32,256], index: 0, kind: input, shape index: {}]   ;;  %s594_s1 = inlined_call_operand.hbm [shape: f32[32,256], index: 1, kind: output, shape index: {}]  }
   0x1   :  { %8 = vsyncpa [#allocation3 + $0x1], 0 }
   0x2   :  { %9 = vsyncpa [#allocation4], 0 }
   0x3   :  { %11 = vsyncpa [#allocation4 + $0x1], 0  ;;  %s429_s6 = smov 0   ;;  %s431_s7 = smov 0  }
   0x4   :  { %s433_s8 = smov 0   ;;  %s435_s9 = smov 0  }
   0x5 LB: > { %s450_s10 = sadd.s32 4294967295, %s409_s9   ;;  %s247_s11 = sadd.s32 4294967294, %s409_s9   ;;  %s409_s9 = sphi %s435_s9, %s608_s9   ;;  %s405_s8 = sphi %s433_s8, %s607_s8   ;;  %s401_s7 = sphi %s431_s7, %s606_s7   ;;  %s397_s6 = sphi %s429_s6, %s605_s6  }
   0x6   : > { %s454_s12 = sadd.s32 1, %s409_s9   ;;  %s24_s13 = sadd.s32 1, %s405_s8 }
   0x7   : > { %s21_s14 = ssub.s32 %s409_s9, %s454_s12  ;;  %p31_p0 = scmp.ne.s32.totalorder %s405_s8, %s401_s7 }
   0x8   : > { %p22_p1 = scmp.eq.s32.totalorder %s21_s14, 0  ;;  %p32_p2 = scmp.eq.s32.totalorder %s409_s9, 0 }
   0x9   : > { %p37_p3 = scmp.ne.s32.totalorder %s401_s7, %s397_s6  ;;  %p38_p4 = scmp.eq.s32.totalorder %s450_s10, 0 }
   0xa   : > { %s466_s15 = scalar_select %p22_p1, %s405_s8, %s24_s13  }
   0xb   : > { %p468_p5 = por %p32_p2, %p31_p0  ;;  %p472_p6 = por %p38_p4, %p37_p3 }
   0xc   : > { %p61_p7 = scmp.eq.s32.totalorder %s450_s10, 1  ;;  %p67_p8 = scmp.eq.s32.totalorder %s247_s11, 1 }
   0xd   : > { %p271_p10 = scmp.lt.s32.totalorder %s409_s9, 2  ;;  %s87_s20 = sand.u32 1, %s405_s8  }
   0xe   : > { %p479_p11 = por %p61_p7, %p31_p0  ;;  %p483_p12 = por %p67_p8, %p37_p3 }
   0xf   : > { %s251_s21 = sshll.u32 %s409_s9, 7  ;;  %s250_s22 = sshll.u32 %s87_s20, 5 }
  0x10   : > { %s598_s18 = scalar_select %p479_p11, 1, 0 }
  0x11   : > { %s599_s19 = scalar_select %p483_p12, 1, 0 }
  0x12   : > { %s492_s25 = scalar_lea.hbm %s593_s0, %s251_s21  ;;  %s91_s26 = scalar_lea.vmem [#allocation2], %s250_s22 }
  0x13   : > { %s97_s27 = sshll.u32 %s91_s26, 4  ;;  %p496_p13 = pnand %p271_p10, %p468_p5  ;;  %s500_s27 = int_to_ptr.vmem [resolvable:$true] %s97_s27 }
  0x14   : > { %s503_s29 = scalar_lea.sflag [#allocation3], %s87_s20  ;;  %s313_s30 = scalar_lea.hbm %s492_s25, 512 }
  0x15   : > { %p314_p1 = scmp.ne.s32.totalorder %s492_s25, %s313_s30  ;;  %p315_p2 = pneg %p496_p13 }
  0x16   : > { %s318_s4 = scalar_lea.hbm %s593_s0, 1024  ;;  %p319_p5 = scmp.lt.u32.totalorder %s492_s25, %s593_s0 }
  0x17   : > { %p316_p3 = pnand %p315_p2, %p314_p1  ;;  %p320_p7 = scmp.lt.u32.totalorder %s318_s4, %s313_s30 }
  0x18   : > { %p322_p10 = scmp.lt.u32.totalorder %s313_s30, %s492_s25 }
  0x19   : > { %p317_p4 = pneg %p316_p3  ;;  %p321_p8 = por %p320_p7, %p319_p5 }
  0x1b   : > { %p323_p9 = por %p322_p10, %p321_p8 }
  0x1d   : > { %p324_p0 = pnand %p323_p9, %p317_p4 }
  0x1f   : > { %327 = shalt.err (!%p324_p0)
}
  0x20   : > { %s328_s13 = scalar_lea.vmem %s500_s27, 512  ;;  %s411_s14 = smov [#allocation2]  }
  0x21   : > { %p329_p1 = scmp.ne.s32.totalorder %s500_s27, %s328_s13  ;;  %s333_s16 = sshll.u32 %s411_s14, 4  ;;  %s334_s16 = int_to_ptr.vmem [resolvable:$false] %s333_s16 }
  0x22   : > { %s335_s20 = scalar_lea.vmem %s334_s16, 1024  ;;  %p336_p11 = scmp.lt.s32.totalorder %s500_s27, %s334_s16 }
  0x23   : > { %p331_p3 = pnand %p329_p1, %p315_p2  ;;  %p337_p5 = scmp.lt.s32.totalorder %s335_s20, %s328_s13 }
  0x25   : > { %p332_p12 = pneg %p331_p3  ;;  %p338_p7 = por %p337_p5, %p336_p11 }
  0x27   : > { %p339_p8 = pnand %p338_p7, %p332_p12 }
  0x29   : > { %342 = shalt.err (!%p339_p8)
}
  0x2a   : > { %s412_s21 = smov 256   ;;  %s413_s22 = smov 128  }
  0x2b   : > { %s414_s23 = smov 8   ;;  %p105_p9 = scmp.lt.s32.totalorder %s409_s9, 3 }
  0x2c   : > { %266 = dma.hbm_to_vmem [thread:$0]  (!%p496_p13), %s492_s25, 512, %s500_s27, %s503_s29, %s412_s21, %s413_s22, %s414_s23  }
  0x2d   : > { %p601_p0 = scmp.ge.s32.totalorder %s409_s9, 1 }
  0x2f   : > { %p106_p2 = pnand %p601_p0, %p105_p9 }
  0x30   : > { %s535_s24 = sand.u32 (!%p106_p2), 1, %s401_s7  }
  0x31   : > { %109 = sbr.rel (%p106_p2) target bundleno = 110 (0x6e), region = 24  ;;  %s253_s26 = sshll.u32 (!%p106_p2), %s535_s24, 5 }
  0x32   : > { %s112_s30 = scalar_lea.sflag (!%p106_p2), [#allocation3], %s535_s24  ;;  %s115_s2 = scalar_lea.vmem (!%p106_p2), [#allocation2], %s253_s26 }
  0x38   : > { %388 = dma.done.wait (%p472_p6), %s112_s30, 512  }
  0x39   : > { %390 = vsyncadd (%p472_p6), %s112_s30, 4294966784  ;;  %v134_v0 = vld [vmem:[%s115_s2] sm:$0xff]  ;;  %v135_v1 = vld [vmem:[%s115_s2 + $0x8] sm:$0xff]  ;;  %s133_s17 = scalar_lea.vmem [#allocation5], %s253_s26  ;;  %s256_s27 = sshll.u32 %s450_s10, 7 }
  0x3a   : > { %v136_v2 = vld [vmem:[%s115_s2 + $0x10] sm:$0xff]  ;;  %v137_v3 = vld [vmem:[%s115_s2 + $0x18] sm:$0xff]  ;;  %v138_v4 = vmul.f32 %v134_v0, %v134_v0  ;;  %v139_v5 = vmul.f32 %v135_v1, %v135_v1  ;;  %s174_s25 = sshll.u32 %s133_s17, 4  ;;  %s549_s3 = scalar_lea.hbm %s594_s1, %s256_s27  ;;  %s544_s25 = int_to_ptr.vmem [resolvable:$true] %s174_s25 }
  0x3b   : > { %v140_v6 = vmul.f32 %v136_v2, %v136_v2  ;;  %v141_v7 = vmul.f32 %v137_v3, %v137_v3  ;;  %s162_s10 = scalar_lea.sflag [#allocation4], %s535_s24  ;;  %s343_s4 = scalar_lea.vmem %s544_s25, 512 }
  0x3c   : > { %v142_v8 = vadd.f32 %v139_v5, %v138_v4  ;;  %p344_p6 = scmp.ne.s32.totalorder %s544_s25, %s343_s4  ;;  %p602_p11 = scmp.ne.s32.totalorder %s598_s18, 0 }
  0x3d   : > { %s415_s5 = smov [#allocation5]  }
  0x3e   : > { %v143_v9 = vadd.f32 %v142_v8, %v140_v6  ;;  %p345_p12 = pnand %p344_p6, %p602_p11  ;;  %s347_s11 = sshll.u32 %s415_s5, 4  ;;  %s348_s11 = int_to_ptr.vmem [resolvable:$false] %s347_s11 }
  0x3f   : > { %s349_s13 = scalar_lea.vmem %s348_s11, 1024  ;;  %p350_p4 = scmp.lt.s32.totalorder %s544_s25, %s348_s11 }
  0x40   : > { %v144_v10 = vadd.f32 %v143_v9, %v141_v7  ;;  %p346_p13 = pneg %p345_p12  ;;  %p351_p10 = scmp.lt.s32.totalorder %s349_s13, %s343_s4 }
  0x42   : > { %v145_v11 = vrot.slane %v144_v10, 4  ;;  %p352_p1 = por %p351_p10, %p350_p4 }
  0x44   : > { %v146_v12 = vadd.f32 %v145_v11, %v144_v10  ;;  %p353_p3 = pnand %p352_p1, %p346_p13 }
  0x46   : > { %v147_v13 = vrot.slane %v146_v12, 2 }
  0x48   : > { %v148_v14 = vadd.f32 %v147_v13, %v146_v12 }
  0x4a   : > { %v149_v15 = vrot.slane %v148_v14, 1 }
  0x4c   : > { %v150_v16 = vadd.f32 %v149_v15, %v148_v14 }
  0x4e   : > { %v151_v17 = vmax.f32 %v150_v16, 1e-24 }
  0x50   : > { %311 = vrsqrt.f32 %v151_v17 }
  0x5a   : > { %v312_v18 = vpop.eup %311 }
  0x5b   : > { %v153_v19 = vmul.f32 %v312_v18, %v134_v0  ;;  %v154_v20 = vmul.f32 %v312_v18, %v135_v1  ;;  %v155_v21 = vmul.f32 %v312_v18, %v136_v2  ;;  %v156_v22 = vmul.f32 %v312_v18, %v137_v3 }
  0x5d   : > { %157 = vst [vmem:[%s133_s17] sm:$0xff] %v153_v19  ;;  %158 = vst [vmem:[%s133_s17 + $0x8] sm:$0xff] %v154_v20 }
  0x5e   : > { %159 = vst [vmem:[%s133_s17 + $0x10] sm:$0xff] %v155_v21  ;;  %160 = vst [vmem:[%s133_s17 + $0x18] sm:$0xff] %v156_v22 }
  0x5f   : > { %356 = shalt.err (!%p353_p3)
}
  0x60   : > { %s357_s14 = scalar_lea.hbm %s549_s3, 512  ;;  %s361_s21 = scalar_lea.hbm %s594_s1, 1024 }
  0x61   : > { %p358_p5 = scmp.ne.s32.totalorder %s549_s3, %s357_s14  ;;  %p362_p9 = scmp.lt.u32.totalorder %s549_s3, %s594_s1 }
  0x62   : > { %p363_p0 = scmp.lt.u32.totalorder %s361_s21, %s357_s14  ;;  %p365_p6 = scmp.lt.u32.totalorder %s357_s14, %s549_s3 }
  0x63   : > { %p359_p7 = pnand %p358_p5, %p602_p11 }
  0x64   : > { %p364_p2 = por %p363_p0, %p362_p9 }
  0x65   : > { %p360_p8 = pneg %p359_p7 }
  0x66   : > { %p366_p12 = por %p365_p6, %p364_p2 }
  0x68   : > { %p367_p13 = pnand %p366_p12, %p360_p8 }
  0x6a   : > { %370 = shalt.err (!%p367_p13)
}
  0x6b   : > { %s416_s26 = smov 128   ;;  %s417_s30 = smov 256  }
  0x6c   : > { %s418_s2 = smov 8  }
  0x6d   : > { %261 = dma.vmem_to_hbm [thread:$0]  (%p602_p11), %s544_s25, 512, %s549_s3, %s162_s10, %s416_s26, %s417_s30, %s418_s2  }
  0x6e PF: > { %s189_s17 = sand.u32 1, %s397_s6   ;;  %p603_p4 = scmp.ne.s32.totalorder %s599_s19, 0 }
  0x6f   : > { %p604_p10 = scmp.ge.s32.totalorder %s409_s9, 2  ;;  %s190_s27 = scalar_lea.sflag [#allocation4], %s189_s17 }
  0x71   : > { %p268_p1 = pnand %p604_p10, %p603_p4 }
  0x73   : > { %392 = dma.done.wait (!%p268_p1), %s190_s27, 512  }
  0x74   : > { %394 = vsyncadd (!%p268_p1), %s190_s27, 4294966784  ;;  %p14_p3 = scmp.ge.s32.totalorder %s454_s12, 4   ;;  %s605_s6 = smov %s401_s7 }
  0x75   : > { %s606_s7 = smov %s405_s8  ;;  %s607_s8 = smov %s466_s15 }
  0x76   : > { %s608_s9 = smov %s454_s12  ;;  %16 = sbr.rel (!%p14_p3) target bundleno = 5 (0x5), region = 69 }
  0x7d   :  { %195 = vsyncpa [#allocation3], 1 }
  0x7e   :  { %197 = vsyncpa [#allocation3 + $0x1], 1 }
  0x7f   :  { %198 = vsyncpa [#allocation4], 1 }
  0x80   :  { %200 = vsyncpa [#allocation4 + $0x1], 1 }

</bundles_post_ra>
